<compile_context>
chip_gen: v7x
topology: tpu7x:2x2x1
jax: 0.10.0
libtpu: 0.0.40
codegen_flags: <defaults>
</compile_context>

<pallas_src>
import functools

import numpy as np
import jax
import jax.numpy as jnp
from jax import lax
from jax.experimental import pallas as pl
from jax.experimental.pallas import tpu as pltpu

LANE = 128
TILE_ROWS = 1024            # kernel-1 tile: 512 KiB f32 per buffered input
NUM_CORES_SPLIT = 2         # leading 'parallel' axis (v7x megacore); harmless on 1-TC chips
NEGATIVE_RATIO = 3.0
EPS = 1e-6
N_SEARCH = 16               # 16 x 2-bit radix passes resolve bits 30..0 of the f32 pattern
VMEM_LIMIT = 32 * 1024 * 1024
INT32_MAX = 2147483647


def _cdiv(a, b):
    return -(-a // b)


# --------------------------------------------------------------------------- #
# Kernel 1: elementwise BCE, negative-loss map and streamed per-block stats.
# Grid = (core, block); 'parallel' leading axis, per-core accumulator slice.
# --------------------------------------------------------------------------- #
def bce_stats_kernel(pred_ref, gt_ref, mask_ref, negloss_ref, acc_ref, *,
                     tile_rows, rows_valid, num_blocks, blocks_per_core,
                     need_row_mask, hard_labels):
    c = pl.program_id(0)                                  # megacore split
    i = pl.program_id(1)                                  # block within this core
    gblk_raw = c * blocks_per_core + i
    # Tail steps of the odd-split core re-run the last real block (idempotent
    # output rewrite); their stat update is gated off below.
    gblk = jnp.minimum(gblk_raw, num_blocks - 1)

    @pl.when(i == 0)
    def _init():                                          # each core zeroes its own slice
        acc_ref[...] = jnp.zeros_like(acc_ref)

    pred = pred_ref[...].astype(jnp.float32)              # upcast narrow dtypes at load
    gt = gt_ref[...].astype(jnp.float32)
    mask = mask_ref[...].astype(jnp.float32)

    if need_row_mask:
        # Last input block is partial: neutralize the garbage overhang before
        # the logs so NaN/Inf can never reach the accumulators.  Only traced
        # when the shape is actually ragged.
        row = lax.broadcasted_iota(jnp.int32, (tile_rows, LANE), 0)
        valid = (gblk * tile_rows + row) < rows_valid
        pred = jnp.where(valid, pred, 0.5)
        gt = jnp.where(valid, gt, 0.0)
        mask = jnp.where(valid, mask, 0.0)

    # (gt * mask).byte() / ((1 - gt) * mask).byte() -> truncation toward zero.
    positive = jnp.floor(gt * mask)
    negative = jnp.floor((1.0 - gt) * mask)

    if hard_labels:
        # Single-log variant (valid only for hard {0,1} labels).
        loss = -jnp.maximum(jnp.log(jnp.where(gt > 0.5, pred, 1.0 - pred)), -100.0)
    else:
        # binary_cross_entropy(pred, gt, reduction='none') with logs clamped at -100.
        log_p = jnp.maximum(jnp.log(pred), -100.0)
        log_1mp = jnp.maximum(jnp.log(1.0 - pred), -100.0)
        loss = -(gt * log_p + (1.0 - gt) * log_1mp)

    # f32 on purpose: the downstream radix select is exact on the bit pattern.
    negloss_ref[...] = loss * negative

    @pl.when(gblk_raw < num_blocks)                       # skip duplicated tail steps
    def _accum():
        # Per-block sublane reduction into tiny (1, LANE) slices: no full-tile RMW.
        acc_ref[0, 0] += jnp.sum(positive, axis=0, keepdims=True)
        acc_ref[0, 1] += jnp.sum(negative, axis=0, keepdims=True)
        acc_ref[0, 2] += jnp.sum(loss * positive, axis=0, keepdims=True)


# --------------------------------------------------------------------------- #
# Kernel 2: exact top-k SUM of the negative-loss map via radix threshold-select.
# Grid = (pass, block).  Passes 0..15: 2-bit MSB-first radix search on the int32
# view of the (non-negative) f32 values.  Pass 16: accumulate sum/count above
# the exact k-th largest value plus its tie correction, emit one scalar.
# --------------------------------------------------------------------------- #
def topk_sum_kernel(k_ref, negloss_ref, out_ref, cnt_ref, sum_ref, max_ref, sm_ref):
    it = pl.program_id(0)
    blk = pl.program_id(1)
    nblk = pl.num_programs(1)
    k = k_ref[0]

    def candidates(prefix, step):
        c1 = prefix | step
        c2 = prefix | (step + step)
        c3 = prefix | (step + step + step)
        # In the very first pass 2*step / 3*step spill into the sign bit;
        # saturate them so they can never be selected (their counts are 0 < k).
        c2 = jnp.where(c2 < prefix, INT32_MAX, c2)
        c3 = jnp.where(c3 < prefix, INT32_MAX, c3)
        return c1, c2, c3

    @pl.when(jnp.logical_and(it == 0, blk == 0))
    def _init():
        sm_ref[0] = jnp.int32(0)                          # resolved prefix bits
        sm_ref[1] = jnp.int32(1 << 30)                    # current 2-bit radix step
        cnt_ref[...] = jnp.zeros((3, 1, LANE), jnp.int32)
        sum_ref[...] = jnp.zeros((1, LANE), jnp.float32)
        max_ref[...] = jnp.full((1, LANE), -jnp.inf, jnp.float32)

    @pl.when(jnp.logical_and(it > 0, blk == 0))
    def _decide():                                        # finalize the previous pass
        prefix = sm_ref[0]
        step = sm_ref[1]
        c1, c2, c3 = candidates(prefix, step)
        n1 = jnp.sum(cnt_ref[0])
        n2 = jnp.sum(cnt_ref[1])
        n3 = jnp.sum(cnt_ref[2])
        prefix = jnp.where(n1 >= k, c1, prefix)
        prefix = jnp.where(n2 >= k, c2, prefix)
        prefix = jnp.where(n3 >= k, c3, prefix)
        sm_ref[0] = prefix
        sm_ref[1] = step >> 2
        cnt_ref[...] = jnp.zeros((3, 1, LANE), jnp.int32)

    @pl.when(it < N_SEARCH)
    def _count():                                         # count v >= each candidate
        prefix = sm_ref[0]
        step = sm_ref[1]
        c1, c2, c3 = candidates(prefix, step)
        bits = pltpu.bitcast(negloss_ref[...], jnp.int32)
        cnt_ref[0] += jnp.sum((bits >= c1).astype(jnp.int32), axis=0, keepdims=True)
        cnt_ref[1] += jnp.sum((bits >= c2).astype(jnp.int32), axis=0, keepdims=True)
        cnt_ref[2] += jnp.sum((bits >= c3).astype(jnp.int32), axis=0, keepdims=True)

    @pl.when(it == N_SEARCH)
    def _final():                                         # S(>thr), C(>thr), exact thr
        prefix = sm_ref[0]
        v = negloss_ref[...]
        bits = pltpu.bitcast(v, jnp.int32)
        above = bits > prefix
        cnt_ref[0] += jnp.sum(above.astype(jnp.int32), axis=0, keepdims=True)
        sum_ref[...] += jnp.sum(jnp.where(above, v, 0.0), axis=0, keepdims=True)
        max_ref[...] = jnp.maximum(
            max_ref[...],
            jnp.max(jnp.where(above, -jnp.inf, v), axis=0, keepdims=True))

        @pl.when(blk == nblk - 1)
        def _emit():
            count_above = jnp.sum(cnt_ref[0])
            sum_above = jnp.sum(sum_ref[...])
            thr = jnp.max(max_ref[...])                   # exact k-th largest value
            rest = jnp.maximum(k - count_above, 0).astype(jnp.float32)
            out_ref[...] = jnp.full((1, LANE), sum_above + rest * thr, jnp.float32)


# --------------------------------------------------------------------------- #
# Wrapper
# --------------------------------------------------------------------------- #
def _as_rows(x, pad):
    # Zero padding is safe: gt=0, mask=0 -> positive=negative=negloss=0.
    # For real DB maps (W a multiple of 128) pad == 0 and no HBM copy is made.
    flat = x.reshape(-1)
    if pad:
        flat = jnp.concatenate([flat, jnp.zeros((pad,), flat.dtype)])
    return flat.reshape(-1, LANE)


def balance_cross_entropy_loss(pred, gt, mask, negative_ratio=NEGATIVE_RATIO,
                               eps=EPS, tile_rows=TILE_ROWS, hard_labels=False):
    """BalanceLoss forward (BCELoss branch). pred/gt: (N,1,H,W); mask: (N,H,W) or (N,1,H,W)."""
    pred = jnp.asarray(pred)
    gt = jnp.asarray(gt)
    mask = jnp.asarray(mask)
    if mask.ndim == pred.ndim - 1:
        mask = jnp.expand_dims(mask, 1)        # (N,H,W) -> (N,1,H,W)

    shape = jnp.broadcast_shapes(pred.shape, gt.shape, mask.shape)
    pred_b = jnp.broadcast_to(pred, shape)     # no-ops when shapes already agree
    gt_b = jnp.broadcast_to(gt, shape)
    mask_b = jnp.broadcast_to(mask, shape)

    total = int(np.prod(shape))
    pad = (-total) % LANE
    rows = (total + pad) // LANE

    pred2 = _as_rows(pred_b, pad)
    gt2 = _as_rows(gt_b, pad)
    mask2 = _as_rows(mask_b, pad)

    tile1 = rows if rows <= tile_rows else tile_rows
    nb1 = _cdiv(rows, tile1)
    rows1 = nb1 * tile1                        # negloss rows (padded rows are exact 0.0)
    need_row_mask = rows1 != rows

    num_cores = NUM_CORES_SPLIT if nb1 >= NUM_CORES_SPLIT else 1
    bpc = _cdiv(nb1, num_cores)

    in_map = lambda c, i: (jnp.minimum(c * bpc + i, nb1 - 1), 0)

    kernel1 = functools.partial(
        bce_stats_kernel, tile_rows=tile1, rows_valid=rows, num_blocks=nb1,
        blocks_per_core=bpc, need_row_mask=need_row_mask, hard_labels=hard_labels)

    neg_loss2d, acc = pl.pallas_call(
        kernel1,
        out_shape=(jax.ShapeDtypeStruct((rows1, LANE), jnp.float32),
                   jax.ShapeDtypeStruct((num_cores, 3, 1, LANE), jnp.float32)),
        grid_spec=pltpu.PrefetchScalarGridSpec(
            num_scalar_prefetch=0,
            grid=(num_cores, bpc),
            in_specs=[pl.BlockSpec((tile1, LANE), in_map)] * 3,
            out_specs=(pl.BlockSpec((tile1, LANE), in_map),
                       pl.BlockSpec((1, 3, 1, LANE), lambda c, i: (c, 0, 0, 0)))),
        compiler_params=pltpu.CompilerParams(
            dimension_semantics=("parallel", "arbitrary"),
            vmem_limit_bytes=VMEM_LIMIT),
    )(pred2, gt2, mask2)

    # Tiny (num_cores,3,1,LANE) reduce outside; counts exact up to 2^24 masked px.
    stats = jnp.sum(acc, axis=(0, 2, 3))
    positive_count = stats[0].astype(jnp.int32)
    negative_total = stats[1].astype(jnp.int32)
    positive_loss_sum = stats[2]

    # negative_count = min(int(negative.sum()), int(positive_count * negative_ratio))
    negative_count = jnp.minimum(
        negative_total, (stats[0] * float(negative_ratio)).astype(jnp.int32))

    # Kernel-2 tile: bigger blocks amortize its (N_SEARCH+1)x per-step overhead;
    # keep it an exact divisor of rows1 so there is never a ragged block.
    mult = 1
    for m in (4, 2):
        if nb1 % m == 0:
            mult = m
            break
    tile2 = tile1 * mult
    nb2 = rows1 // tile2

    topk_row = pl.pallas_call(
        topk_sum_kernel,
        out_shape=jax.ShapeDtypeStruct((1, LANE), jnp.float32),
        grid_spec=pltpu.PrefetchScalarGridSpec(
            num_scalar_prefetch=1,
            grid=(N_SEARCH + 1, nb2),
            in_specs=[pl.BlockSpec((tile2, LANE), lambda it, blk, k: (blk, 0))],
            out_specs=pl.BlockSpec((1, LANE), lambda it, blk, k: (0, 0)),
            scratch_shapes=[pltpu.VMEM((3, 1, LANE), jnp.int32),
                            pltpu.VMEM((1, LANE), jnp.float32),
                            pltpu.VMEM((1, LANE), jnp.float32),
                            pltpu.SMEM((2,), jnp.int32)]),
        compiler_params=pltpu.CompilerParams(
            dimension_semantics=("arbitrary", "arbitrary"),
            vmem_limit_bytes=VMEM_LIMIT),
    )(negative_count.reshape(1).astype(jnp.int32), neg_loss2d)

    topk_sum = topk_row[0, 0]

    # negative_count == 0 reduces to positive_loss.sum() / (positive_count + eps),
    # identical to the module's else-branch.
    balance_loss = (positive_loss_sum + topk_sum) / (
        positive_count.astype(jnp.float32) + negative_count.astype(jnp.float32) + eps)
    return balance_loss


# --------------------------------------------------------------------------- #
# Pure-JAX reference mirroring the PyTorch module (BCELoss branch).
# --------------------------------------------------------------------------- #
def _reference_loss(pred, gt, mask, negative_ratio=NEGATIVE_RATIO, eps=EPS):
    pred = jnp.asarray(pred).astype(jnp.float32)
    gt = jnp.asarray(gt).astype(jnp.float32)
    mask = jnp.asarray(mask).astype(jnp.float32)
    if mask.ndim == pred.ndim - 1:
        mask = jnp.expand_dims(mask, 1)
    positive = jnp.floor(gt * mask)
    negative = jnp.floor((1.0 - gt) * mask)
    positive_count = jnp.sum(positive).astype(jnp.int32)
    negative_count = jnp.minimum(
        jnp.sum(negative).astype(jnp.int32),
        (jnp.sum(positive) * negative_ratio).astype(jnp.int32))
    log_p = jnp.maximum(jnp.log(pred), -100.0)
    log_1mp = jnp.maximum(jnp.log(1.0 - pred), -100.0)
    loss = -(gt * log_p + (1.0 - gt) * log_1mp)
    positive_loss = loss * positive
    negative_loss = loss * negative
    flat = -jnp.sort(-negative_loss.reshape(-1))
    topk_sum = jnp.sum(jnp.where(jnp.arange(flat.shape[0]) < negative_count, flat, 0.0))
    return (jnp.sum(positive_loss) + topk_sum) / (
        positive_count.astype(jnp.float32) + negative_count.astype(jnp.float32) + eps)


if __name__ == "__main__":
    key = jax.random.PRNGKey(0)
    k1, k2, k3, k4, k5, k6 = jax.random.split(key, 6)

    # Case 1: module-typical signature at a small shape; gt/mask carried in bf16
    # (lossless for {0,1} labels, halves their HBM read traffic).
    N, H, W = 2, 16, 16
    pred = jax.nn.sigmoid(jax.random.normal(k1, (N, 1, H, W), jnp.float32))
    gt = (jax.random.uniform(k2, (N, 1, H, W)) > 0.85).astype(jnp.bfloat16)
    mask = (jax.random.uniform(k3, (N, H, W)) > 0.3).astype(jnp.bfloat16)

    loss_fn = jax.jit(balance_cross_entropy_loss)
    out = jax.block_until_ready(loss_fn(pred, gt, mask))
    ref = jax.block_until_ready(_reference_loss(pred, gt, mask))
    np.testing.assert_allclose(np.asarray(out), np.asarray(ref), rtol=1e-5, atol=1e-6)

    # Case 2: tiny tile forces the multi-block / megacore-split / ragged-tail /
    # duplicated-tail-step code paths (what a real 640x640 map hits at tile 1024).
    N2, H2, W2 = 2, 48, 48
    pred2 = jax.nn.sigmoid(jax.random.normal(k4, (N2, 1, H2, W2), jnp.float32))
    gt2 = (jax.random.uniform(k5, (N2, 1, H2, W2)) > 0.9).astype(jnp.float32)
    mask2 = (jax.random.uniform(k6, (N2, H2, W2)) > 0.25).astype(jnp.float32)

    loss_fn2 = jax.jit(functools.partial(balance_cross_entropy_loss, tile_rows=8))
    out2 = jax.block_until_ready(loss_fn2(pred2, gt2, mask2))
    ref2 = jax.block_until_ready(_reference_loss(pred2, gt2, mask2))
    np.testing.assert_allclose(np.asarray(out2), np.asarray(ref2), rtol=1e-5, atol=1e-6)

    print("KERNEL_OK")
</pallas_src>

<mosaic_0001>
module attributes {stable_mosaic.version = 11 : i64} {
  func.func @bce_stats_kernel(%arg0: i32, %arg1: i32, %arg2: memref<4x128xf32, #tpu.memory_space<vmem>>, %arg3: memref<4x128xbf16, #tpu.memory_space<vmem>>, %arg4: memref<4x128xbf16, #tpu.memory_space<vmem>>, %arg5: memref<4x128xf32, #tpu.memory_space<vmem>>, %arg6: memref<1x3x1x128xf32, #tpu.memory_space<vmem>>) attributes {dimension_semantics = [#tpu.dimension_semantics<parallel>, #tpu.dimension_semantics<arbitrary>], iteration_bounds = array<i64: 1, 1>, scalar_prefetch = 0 : i64, scratch_operands = 0 : i64, tpu.core_type = #tpu.core_type<tc>, window_params = [{transform_indices = @transform_0, window_bounds = array<i64: 4, 128>}, {transform_indices = @transform_1, window_bounds = array<i64: 4, 128>}, {transform_indices = @transform_2, window_bounds = array<i64: 4, 128>}, {transform_indices = @transform_3, window_bounds = array<i64: 4, 128>}, {transform_indices = @transform_4, window_bounds = array<i64: 1, 3, 1, 128>}]} {
    %c1_i32 = arith.constant 1 : i32
    %0 = arith.muli %arg0, %c1_i32 : i32
    %1 = arith.addi %0, %arg1 : i32
    %c0_i32 = arith.constant 0 : i32
    %2 = arith.cmpi eq, %arg1, %c0_i32 : i32
    %3 = arith.extui %2 : i1 to i32
    %c0_i32_0 = arith.constant 0 : i32
    %4 = arith.cmpi ne, %3, %c0_i32_0 : i32
    scf.if %4 {
      %cst_15 = arith.constant 0.000000e+00 : f32
      %36 = vector.broadcast %cst_15 : f32 to vector<1x3x1x128xf32>
      %c0_16 = arith.constant 0 : index
      %c0_17 = arith.constant 0 : index
      %c0_18 = arith.constant 0 : index
      %c0_19 = arith.constant 0 : index
      %37 = vector.load %arg6[%c0_16, %c0_17, %c0_18, %c0_19] : memref<1x3x1x128xf32, #tpu.memory_space<vmem>>, vector<1x3x1x128xf32>
      tpu.vector_store %arg6[%c0_16, %c0_17, %c0_18, %c0_19], %36 {strides = array<i32>} : memref<1x3x1x128xf32, #tpu.memory_space<vmem>>, vector<1x3x1x128xf32>,
    } else {
    }
    %c0 = arith.constant 0 : index
    %c0_1 = arith.constant 0 : index
    %5 = vector.load %arg2[%c0, %c0_1] : memref<4x128xf32, #tpu.memory_space<vmem>>, vector<4x128xf32>
    %c0_2 = arith.constant 0 : index
    %c0_3 = arith.constant 0 : index
    %6 = vector.load %arg3[%c0_2, %c0_3] : memref<4x128xbf16, #tpu.memory_space<vmem>>, vector<4x128xbf16>
    %7 = arith.extf %6 : vector<4x128xbf16> to vector<4x128xf32>
    %c0_4 = arith.constant 0 : index
    %c0_5 = arith.constant 0 : index
    %8 = vector.load %arg4[%c0_4, %c0_5] : memref<4x128xbf16, #tpu.memory_space<vmem>>, vector<4x128xbf16>
    %9 = arith.extf %8 : vector<4x128xbf16> to vector<4x128xf32>
    %10 = arith.mulf %7, %9 : vector<4x128xf32>
    %11 = math.floor %10 : vector<4x128xf32>
    %cst = arith.constant 1.000000e+00 : f32
    %12 = vector.broadcast %cst : f32 to vector<4x128xf32>
    %13 = arith.subf %12, %7 : vector<4x128xf32>
    %14 = arith.mulf %13, %9 : vector<4x128xf32>
    %15 = math.floor %14 : vector<4x128xf32>
    %16 = math.log %5 : vector<4x128xf32>
    %cst_6 = arith.constant -1.000000e+02 : f32
    %17 = vector.broadcast %cst_6 : f32 to vector<4x128xf32>
    %18 = arith.maximumf %16, %17 : vector<4x128xf32>
    %cst_7 = arith.constant 1.000000e+00 : f32
    %19 = vector.broadcast %cst_7 : f32 to vector<4x128xf32>
    %20 = arith.subf %19, %5 : vector<4x128xf32>
    %21 = math.log %20 : vector<4x128xf32>
    %cst_8 = arith.constant -1.000000e+02 : f32
    %22 = vector.broadcast %cst_8 : f32 to vector<4x128xf32>
    %23 = arith.maximumf %21, %22 : vector<4x128xf32>
    %24 = arith.mulf %7, %18 : vector<4x128xf32>
    %cst_9 = arith.constant 1.000000e+00 : f32
    %25 = vector.broadcast %cst_9 : f32 to vector<4x128xf32>
    %26 = arith.subf %25, %7 : vector<4x128xf32>
    %27 = arith.mulf %26, %23 : vector<4x128xf32>
    %28 = arith.addf %24, %27 : vector<4x128xf32>
    %cst_10 = arith.constant 0.000000e+00 : f32
    %29 = vector.broadcast %cst_10 : f32 to vector<4x128xf32>
    %30 = arith.subf %29, %28 : vector<4x128xf32>
    %31 = arith.mulf %30, %15 : vector<4x128xf32>
    %c0_11 = arith.constant 0 : index
    %c0_12 = arith.constant 0 : index
    %32 = vector.load %arg5[%c0_11, %c0_12] : memref<4x128xf32, #tpu.memory_space<vmem>>, vector<4x128xf32>
    tpu.vector_store %arg5[%c0_11, %c0_12], %31 {strides = array<i32>} : memref<4x128xf32, #tpu.memory_space<vmem>>, vector<4x128xf32>,
    %c1_i32_13 = arith.constant 1 : i32
    %33 = arith.cmpi slt, %1, %c1_i32_13 : i32
    %34 = arith.extui %33 : i1 to i32
    %c0_i32_14 = arith.constant 0 : i32
    %35 = arith.cmpi ne, %34, %c0_i32_14 : i32
    scf.if %35 {
      %c0_15 = arith.constant 0 : index
      %c0_16 = arith.constant 0 : index
      %c0_17 = arith.constant 0 : index
      %c0_18 = arith.constant 0 : index
      %36 = vector.load %arg6[%c0_15, %c0_16, %c0_17, %c0_18] : memref<1x3x1x128xf32, #tpu.memory_space<vmem>>, vector<1x1x1x128xf32>
      %37 = vector.shape_cast %36 : vector<1x1x1x128xf32> to vector<1x128xf32>
      %cst_19 = arith.constant dense<0.000000e+00> : vector<128xf32>
      %38 = vector.multi_reduction <add>, %11, %cst_19 [0] : vector<4x128xf32> to vector<128xf32>
      %39 = vector.shape_cast %38 : vector<128xf32> to vector<1x128xf32>
      %40 = arith.addf %37, %39 : vector<1x128xf32>
      %c0_20 = arith.constant 0 : index
      %c0_21 = arith.constant 0 : index
      %c0_22 = arith.constant 0 : index
      %c0_23 = arith.constant 0 : index
      %41 = vector.load %arg6[%c0_20, %c0_21, %c0_22, %c0_23] : memref<1x3x1x128xf32, #tpu.memory_space<vmem>>, vector<1x1x1x128xf32>
      %42 = vector.shape_cast %41 : vector<1x1x1x128xf32> to vector<1x128xf32>
      %43 = vector.shape_cast %40 : vector<1x128xf32> to vector<1x1x1x128xf32>
      tpu.vector_store %arg6[%c0_20, %c0_21, %c0_22, %c0_23], %43 {strides = array<i32>} : memref<1x3x1x128xf32, #tpu.memory_space<vmem>>, vector<1x1x1x128xf32>,
      %c0_24 = arith.constant 0 : index
      %c1 = arith.constant 1 : index
      %c0_25 = arith.constant 0 : index
      %c0_26 = arith.constant 0 : index
      %44 = vector.load %arg6[%c0_24, %c1, %c0_25, %c0_26] : memref<1x3x1x128xf32, #tpu.memory_space<vmem>>, vector<1x1x1x128xf32>
      %45 = vector.shape_cast %44 : vector<1x1x1x128xf32> to vector<1x128xf32>
      %cst_27 = arith.constant dense<0.000000e+00> : vector<128xf32>
      %46 = vector.multi_reduction <add>, %15, %cst_27 [0] : vector<4x128xf32> to vector<128xf32>
      %47 = vector.shape_cast %46 : vector<128xf32> to vector<1x128xf32>
      %48 = arith.addf %45, %47 : vector<1x128xf32>
      %c0_28 = arith.constant 0 : index
      %c1_29 = arith.constant 1 : index
      %c0_30 = arith.constant 0 : index
      %c0_31 = arith.constant 0 : index
      %49 = vector.load %arg6[%c0_28, %c1_29, %c0_30, %c0_31] : memref<1x3x1x128xf32, #tpu.memory_space<vmem>>, vector<1x1x1x128xf32>
      %50 = vector.shape_cast %49 : vector<1x1x1x128xf32> to vector<1x128xf32>
      %51 = vector.shape_cast %48 : vector<1x128xf32> to vector<1x1x1x128xf32>
      tpu.vector_store %arg6[%c0_28, %c1_29, %c0_30, %c0_31], %51 {strides = array<i32>} : memref<1x3x1x128xf32, #tpu.memory_space<vmem>>, vector<1x1x1x128xf32>,
      %c0_32 = arith.constant 0 : index
      %c2 = arith.constant 2 : index
      %c0_33 = arith.constant 0 : index
      %c0_34 = arith.constant 0 : index
      %52 = vector.load %arg6[%c0_32, %c2, %c0_33, %c0_34] : memref<1x3x1x128xf32, #tpu.memory_space<vmem>>, vector<1x1x1x128xf32>
      %53 = vector.shape_cast %52 : vector<1x1x1x128xf32> to vector<1x128xf32>
      %54 = arith.mulf %30, %11 : vector<4x128xf32>
      %cst_35 = arith.constant dense<0.000000e+00> : vector<128xf32>
      %55 = vector.multi_reduction <add>, %54, %cst_35 [0] : vector<4x128xf32> to vector<128xf32>
      %56 = vector.shape_cast %55 : vector<128xf32> to vector<1x128xf32>
      %57 = arith.addf %53, %56 : vector<1x128xf32>
      %c0_36 = arith.constant 0 : index
      %c2_37 = arith.constant 2 : index
      %c0_38 = arith.constant 0 : index
      %c0_39 = arith.constant 0 : index
      %58 = vector.load %arg6[%c0_36, %c2_37, %c0_38, %c0_39] : memref<1x3x1x128xf32, #tpu.memory_space<vmem>>, vector<1x1x1x128xf32>
      %59 = vector.shape_cast %58 : vector<1x1x1x128xf32> to vector<1x128xf32>
      %60 = vector.shape_cast %57 : vector<1x128xf32> to vector<1x1x1x128xf32>
      tpu.vector_store %arg6[%c0_36, %c2_37, %c0_38, %c0_39], %60 {strides = array<i32>} : memref<1x3x1x128xf32, #tpu.memory_space<vmem>>, vector<1x1x1x128xf32>,
    } else {
    }
    return
  }
  func.func @transform_0(%arg0: i32, %arg1: i32) -> (i32, i32) {
    %c1_i32 = arith.constant 1 : i32
    %0 = arith.muli %arg0, %c1_i32 : i32
    %1 = arith.addi %0, %arg1 : i32
    %c0_i32 = arith.constant 0 : i32
    %2 = arith.minsi %1, %c0_i32 : i32
    %c0_i32_0 = arith.constant 0 : i32
    %c0_i32_1 = arith.constant 0 : i32
    return %2, %c0_i32_0 : i32, i32
  }
  func.func @transform_1(%arg0: i32, %arg1: i32) -> (i32, i32) {
    %c1_i32 = arith.constant 1 : i32
    %0 = arith.muli %arg0, %c1_i32 : i32
    %1 = arith.addi %0, %arg1 : i32
    %c0_i32 = arith.constant 0 : i32
    %2 = arith.minsi %1, %c0_i32 : i32
    %c0_i32_0 = arith.constant 0 : i32
    %c0_i32_1 = arith.constant 0 : i32
    return %2, %c0_i32_0 : i32, i32
  }
  func.func @transform_2(%arg0: i32, %arg1: i32) -> (i32, i32) {
    %c1_i32 = arith.constant 1 : i32
    %0 = arith.muli %arg0, %c1_i32 : i32
    %1 = arith.addi %0, %arg1 : i32
    %c0_i32 = arith.constant 0 : i32
    %2 = arith.minsi %1, %c0_i32 : i32
    %c0_i32_0 = arith.constant 0 : i32
    %c0_i32_1 = arith.constant 0 : i32
    return %2, %c0_i32_0 : i32, i32
  }
  func.func @transform_3(%arg0: i32, %arg1: i32) -> (i32, i32) {
    %c1_i32 = arith.constant 1 : i32
    %0 = arith.muli %arg0, %c1_i32 : i32
    %1 = arith.addi %0, %arg1 : i32
    %c0_i32 = arith.constant 0 : i32
    %2 = arith.minsi %1, %c0_i32 : i32
    %c0_i32_0 = arith.constant 0 : i32
    %c0_i32_1 = arith.constant 0 : i32
    return %2, %c0_i32_0 : i32, i32
  }
  func.func @transform_4(%arg0: i32, %arg1: i32) -> (i32, i32, i32, i32) {
    %c0_i32 = arith.constant 0 : i32
    %c0_i32_0 = arith.constant 0 : i32
    %c0_i32_1 = arith.constant 0 : i32
    %c0_i32_2 = arith.constant 0 : i32
    return %arg0, %c0_i32, %c0_i32_0, %c0_i32_1 : i32, i32, i32, i32
  }
}

module attributes {stable_mosaic.version = 11 : i64} {
  func.func @topk_sum_kernel(%arg0: i32, %arg1: i32, %arg2: memref<1xi32, #tpu.memory_space<smem>>, %arg3: memref<4x128xf32, #tpu.memory_space<vmem>>, %arg4: memref<1x128xf32, #tpu.memory_space<vmem>>, %arg5: memref<3x1x128xi32, #tpu.memory_space<vmem>>, %arg6: memref<1x128xf32, #tpu.memory_space<vmem>>, %arg7: memref<1x128xf32, #tpu.memory_space<vmem>>, %arg8: memref<2xi32, #tpu.memory_space<smem>>) attributes {dimension_semantics = [#tpu.dimension_semantics<arbitrary>, #tpu.dimension_semantics<arbitrary>], iteration_bounds = array<i64: 17, 1>, scalar_prefetch = 1 : i64, scratch_operands = 4 : i64, tpu.core_type = #tpu.core_type<tc>, window_params = [{transform_indices = @transform_0, window_bounds = array<i64: 4, 128>}, {pipeline_mode = #tpu.pipeline_mode<synchronous>, transform_indices = @transform_1, window_bounds = array<i64: 1, 128>}]} {
    %c0 = arith.constant 0 : index
    %0 = memref.load %arg2[%c0] : memref<1xi32, #tpu.memory_space<smem>>
    %c0_i32 = arith.constant 0 : i32
    %1 = arith.cmpi eq, %arg0, %c0_i32 : i32
    %c0_i32_0 = arith.constant 0 : i32
    %2 = arith.cmpi eq, %arg1, %c0_i32_0 : i32
    %3 = arith.andi %1, %2 : i1
    %4 = arith.extui %3 : i1 to i32
    %c0_i32_1 = arith.constant 0 : i32
    %5 = arith.cmpi ne, %4, %c0_i32_1 : i32
    scf.if %5 {
      %c0_i32_8 = arith.constant 0 : i32
      %c0_9 = arith.constant 0 : index
      %17 = memref.load %arg8[%c0_9] : memref<2xi32, #tpu.memory_space<smem>>
      memref.store %c0_i32_8, %arg8[%c0_9] : memref<2xi32, #tpu.memory_space<smem>>
      %c1073741824_i32 = arith.constant 1073741824 : i32
      %c1 = arith.constant 1 : index
      %18 = memref.load %arg8[%c1] : memref<2xi32, #tpu.memory_space<smem>>
      memref.store %c1073741824_i32, %arg8[%c1] : memref<2xi32, #tpu.memory_space<smem>>
      %c0_i32_10 = arith.constant 0 : i32
      %19 = vector.broadcast %c0_i32_10 : i32 to vector<3x1x128xi32>
      %c0_11 = arith.constant 0 : index
      %c0_12 = arith.constant 0 : index
      %c0_13 = arith.constant 0 : index
      %20 = vector.load %arg5[%c0_11, %c0_12, %c0_13] : memref<3x1x128xi32, #tpu.memory_space<vmem>>, vector<3x1x128xi32>
      tpu.vector_store %arg5[%c0_11, %c0_12, %c0_13], %19 {strides = array<i32>} : memref<3x1x128xi32, #tpu.memory_space<vmem>>, vector<3x1x128xi32>,
      %cst = arith.constant 0.000000e+00 : f32
      %21 = vector.broadcast %cst : f32 to vector<1x128xf32>
      %c0_14 = arith.constant 0 : index
      %c0_15 = arith.constant 0 : index
      %22 = vector.load %arg6[%c0_14, %c0_15] : memref<1x128xf32, #tpu.memory_space<vmem>>, vector<1x128xf32>
      tpu.vector_store %arg6[%c0_14, %c0_15], %21 {strides = array<i32>} : memref<1x128xf32, #tpu.memory_space<vmem>>, vector<1x128xf32>,
      %cst_16 = arith.constant 0xFF800000 : f32
      %23 = vector.broadcast %cst_16 : f32 to vector<1x128xf32>
      %c0_17 = arith.constant 0 : index
      %c0_18 = arith.constant 0 : index
      %24 = vector.load %arg7[%c0_17, %c0_18] : memref<1x128xf32, #tpu.memory_space<vmem>>, vector<1x128xf32>
      tpu.vector_store %arg7[%c0_17, %c0_18], %23 {strides = array<i32>} : memref<1x128xf32, #tpu.memory_space<vmem>>, vector<1x128xf32>,
    } else {
    }
    %c0_i32_2 = arith.constant 0 : i32
    %6 = arith.cmpi sgt, %arg0, %c0_i32_2 : i32
    %c0_i32_3 = arith.constant 0 : i32
    %7 = arith.cmpi eq, %arg1, %c0_i32_3 : i32
    %8 = arith.andi %6, %7 : i1
    %9 = arith.extui %8 : i1 to i32
    %c0_i32_4 = arith.constant 0 : i32
    %10 = arith.cmpi ne, %9, %c0_i32_4 : i32
    scf.if %10 {
      %c0_8 = arith.constant 0 : index
      %17 = memref.load %arg8[%c0_8] : memref<2xi32, #tpu.memory_space<smem>>
      %c1 = arith.constant 1 : index
      %18 = memref.load %arg8[%c1] : memref<2xi32, #tpu.memory_space<smem>>
      %19 = arith.ori %17, %18 : i32
      %20 = arith.addi %18, %18 : i32
      %21 = arith.ori %17, %20 : i32
      %22 = arith.addi %18, %18 : i32
      %23 = arith.addi %22, %18 : i32
      %24 = arith.ori %17, %23 : i32
      %25 = arith.cmpi slt, %21, %17 : i32
      %c2147483647_i32 = arith.constant 2147483647 : i32
      %26 = arith.select %25, %c2147483647_i32, %21 : i32
      %27 = arith.cmpi slt, %24, %17 : i32
      %c2147483647_i32_9 = arith.constant 2147483647 : i32
      %28 = arith.select %27, %c2147483647_i32_9, %24 : i32
      %c0_10 = arith.constant 0 : index
      %c0_11 = arith.constant 0 : index
      %c0_12 = arith.constant 0 : index
      %29 = vector.load %arg5[%c0_10, %c0_11, %c0_12] : memref<3x1x128xi32, #tpu.memory_space<vmem>>, vector<1x1x128xi32>
      %30 = vector.shape_cast %29 : vector<1x1x128xi32> to vector<1x128xi32>
      %31 = vector.shape_cast %30 : vector<1x128xi32> to vector<1x1x128xi32>
      %cst = arith.constant dense<0> : vector<1xi32>
      %32 = vector.multi_reduction <add>, %31, %cst [1, 2] : vector<1x1x128xi32> to vector<1xi32>
      %33 = vector.shape_cast %32 : vector<1xi32> to vector<1x1x1xi32>
      %34 = vector.extract %33[0, 0, 0] : i32 from vector<1x1x1xi32>
      %c1_13 = arith.constant 1 : index
      %c0_14 = arith.constant 0 : index
      %c0_15 = arith.constant 0 : index
      %35 = vector.load %arg5[%c1_13, %c0_14, %c0_15] : memref<3x1x128xi32, #tpu.memory_space<vmem>>, vector<1x1x128xi32>
      %36 = vector.shape_cast %35 : vector<1x1x128xi32> to vector<1x128xi32>
      %37 = vector.shape_cast %36 : vector<1x128xi32> to vector<1x1x128xi32>
      %cst_16 = arith.constant dense<0> : vector<1xi32>
      %38 = vector.multi_reduction <add>, %37, %cst_16 [1, 2] : vector<1x1x128xi32> to vector<1xi32>
      %39 = vector.shape_cast %38 : vector<1xi32> to vector<1x1x1xi32>
      %40 = vector.extract %39[0, 0, 0] : i32 from vector<1x1x1xi32>
      %c2 = arith.constant 2 : index
      %c0_17 = arith.constant 0 : index
      %c0_18 = arith.constant 0 : index
      %41 = vector.load %arg5[%c2, %c0_17, %c0_18] : memref<3x1x128xi32, #tpu.memory_space<vmem>>, vector<1x1x128xi32>
      %42 = vector.shape_cast %41 : vector<1x1x128xi32> to vector<1x128xi32>
      %43 = vector.shape_cast %42 : vector<1x128xi32> to vector<1x1x128xi32>
      %cst_19 = arith.constant dense<0> : vector<1xi32>
      %44 = vector.multi_reduction <add>, %43, %cst_19 [1, 2] : vector<1x1x128xi32> to vector<1xi32>
      %45 = vector.shape_cast %44 : vector<1xi32> to vector<1x1x1xi32>
      %46 = vector.extract %45[0, 0, 0] : i32 from vector<1x1x1xi32>
      %47 = arith.cmpi sge, %34, %0 : i32
      %48 = arith.select %47, %19, %17 : i32
      %49 = arith.cmpi sge, %40, %0 : i32
      %50 = arith.select %49, %26, %48 : i32
      %51 = arith.cmpi sge, %46, %0 : i32
      %52 = arith.select %51, %28, %50 : i32
      %c0_20 = arith.constant 0 : index
      %53 = memref.load %arg8[%c0_20] : memref<2xi32, #tpu.memory_space<smem>>
      memref.store %52, %arg8[%c0_20] : memref<2xi32, #tpu.memory_space<smem>>
      %c2_i32 = arith.constant 2 : i32
      %54 = arith.shrsi %18, %c2_i32 : i32
      %c1_21 = arith.constant 1 : index
      %55 = memref.load %arg8[%c1_21] : memref<2xi32, #tpu.memory_space<smem>>
      memref.store %54, %arg8[%c1_21] : memref<2xi32, #tpu.memory_space<smem>>
      %c0_i32_22 = arith.constant 0 : i32
      %56 = vector.broadcast %c0_i32_22 : i32 to vector<3x1x128xi32>
      %c0_23 = arith.constant 0 : index
      %c0_24 = arith.constant 0 : index
      %c0_25 = arith.constant 0 : index
      %57 = vector.load %arg5[%c0_23, %c0_24, %c0_25] : memref<3x1x128xi32, #tpu.memory_space<vmem>>, vector<3x1x128xi32>
      tpu.vector_store %arg5[%c0_23, %c0_24, %c0_25], %56 {strides = array<i32>} : memref<3x1x128xi32, #tpu.memory_space<vmem>>, vector<3x1x128xi32>,
    } else {
    }
    %c16_i32 = arith.constant 16 : i32
    %11 = arith.cmpi slt, %arg0, %c16_i32 : i32
    %12 = arith.extui %11 : i1 to i32
    %c0_i32_5 = arith.constant 0 : i32
    %13 = arith.cmpi ne, %12, %c0_i32_5 : i32
    scf.if %13 {
      %c0_8 = arith.constant 0 : index
      %17 = memref.load %arg8[%c0_8] : memref<2xi32, #tpu.memory_space<smem>>
      %c1 = arith.constant 1 : index
      %18 = memref.load %arg8[%c1] : memref<2xi32, #tpu.memory_space<smem>>
      %19 = arith.ori %17, %18 : i32
      %20 = arith.addi %18, %18 : i32
      %21 = arith.ori %17, %20 : i32
      %22 = arith.addi %18, %18 : i32
      %23 = arith.addi %22, %18 : i32
      %24 = arith.ori %17, %23 : i32
      %25 = arith.cmpi slt, %21, %17 : i32
      %c2147483647_i32 = arith.constant 2147483647 : i32
      %26 = arith.select %25, %c2147483647_i32, %21 : i32
      %27 = arith.cmpi slt, %24, %17 : i32
      %c2147483647_i32_9 = arith.constant 2147483647 : i32
      %28 = arith.select %27, %c2147483647_i32_9, %24 : i32
      %c0_10 = arith.constant 0 : index
      %c0_11 = arith.constant 0 : index
      %29 = vector.load %arg3[%c0_10, %c0_11] : memref<4x128xf32, #tpu.memory_space<vmem>>, vector<4x128xf32>
      %30 = tpu.bitcast %29 : vector<4x128xf32> -> vector<4x128xi32>
      %c0_12 = arith.constant 0 : index
      %c0_13 = arith.constant 0 : index
      %c0_14 = arith.constant 0 : index
      %31 = vector.load %arg5[%c0_12, %c0_13, %c0_14] : memref<3x1x128xi32, #tpu.memory_space<vmem>>, vector<1x1x128xi32>
      %32 = vector.shape_cast %31 : vector<1x1x128xi32> to vector<1x128xi32>
      %33 = vector.broadcast %19 : i32 to vector<4x128xi32>
      %34 = arith.cmpi sge, %30, %33 : vector<4x128xi32>
      %35 = arith.extui %34 : vector<4x128xi1> to vector<4x128xi32>
      %cst = arith.constant dense<0> : vector<128xi32>
      %36 = vector.multi_reduction <add>, %35, %cst [0] : vector<4x128xi32> to vector<128xi32>
      %37 = vector.shape_cast %36 : vector<128xi32> to vector<1x128xi32>
      %38 = arith.addi %32, %37 : vector<1x128xi32>
      %c0_15 = arith.constant 0 : index
      %c0_16 = arith.constant 0 : index
      %c0_17 = arith.constant 0 : index
      %39 = vector.load %arg5[%c0_15, %c0_16, %c0_17] : memref<3x1x128xi32, #tpu.memory_space<vmem>>, vector<1x1x128xi32>
      %40 = vector.shape_cast %39 : vector<1x1x128xi32> to vector<1x128xi32>
      %41 = vector.shape_cast %38 : vector<1x128xi32> to vector<1x1x128xi32>
      tpu.vector_store %arg5[%c0_15, %c0_16, %c0_17], %41 {strides = array<i32>} : memref<3x1x128xi32, #tpu.memory_space<vmem>>, vector<1x1x128xi32>,
      %c1_18 = arith.constant 1 : index
      %c0_19 = arith.constant 0 : index
      %c0_20 = arith.constant 0 : index
      %42 = vector.load %arg5[%c1_18, %c0_19, %c0_20] : memref<3x1x128xi32, #tpu.memory_space<vmem>>, vector<1x1x128xi32>
      %43 = vector.shape_cast %42 : vector<1x1x128xi32> to vector<1x128xi32>
      %44 = vector.broadcast %26 : i32 to vector<4x128xi32>
      %45 = arith.cmpi sge, %30, %44 : vector<4x128xi32>
      %46 = arith.extui %45 : vector<4x128xi1> to vector<4x128xi32>
      %cst_21 = arith.constant dense<0> : vector<128xi32>
      %47 = vector.multi_reduction <add>, %46, %cst_21 [0] : vector<4x128xi32> to vector<128xi32>
      %48 = vector.shape_cast %47 : vector<128xi32> to vector<1x128xi32>
      %49 = arith.addi %43, %48 : vector<1x128xi32>
      %c1_22 = arith.constant 1 : index
      %c0_23 = arith.constant 0 : index
      %c0_24 = arith.constant 0 : index
      %50 = vector.load %arg5[%c1_22, %c0_23, %c0_24] : memref<3x1x128xi32, #tpu.memory_space<vmem>>, vector<1x1x128xi32>
      %51 = vector.shape_cast %50 : vector<1x1x128xi32> to vector<1x128xi32>
      %52 = vector.shape_cast %49 : vector<1x128xi32> to vector<1x1x128xi32>
      tpu.vector_store %arg5[%c1_22, %c0_23, %c0_24], %52 {strides = array<i32>} : memref<3x1x128xi32, #tpu.memory_space<vmem>>, vector<1x1x128xi32>,
      %c2 = arith.constant 2 : index
      %c0_25 = arith.constant 0 : index
      %c0_26 = arith.constant 0 : index
      %53 = vector.load %arg5[%c2, %c0_25, %c0_26] : memref<3x1x128xi32, #tpu.memory_space<vmem>>, vector<1x1x128xi32>
      %54 = vector.shape_cast %53 : vector<1x1x128xi32> to vector<1x128xi32>
      %55 = vector.broadcast %28 : i32 to vector<4x128xi32>
      %56 = arith.cmpi sge, %30, %55 : vector<4x128xi32>
      %57 = arith.extui %56 : vector<4x128xi1> to vector<4x128xi32>
      %cst_27 = arith.constant dense<0> : vector<128xi32>
      %58 = vector.multi_reduction <add>, %57, %cst_27 [0] : vector<4x128xi32> to vector<128xi32>
      %59 = vector.shape_cast %58 : vector<128xi32> to vector<1x128xi32>
      %60 = arith.addi %54, %59 : vector<1x128xi32>
      %c2_28 = arith.constant 2 : index
      %c0_29 = arith.constant 0 : index
      %c0_30 = arith.constant 0 : index
      %61 = vector.load %arg5[%c2_28, %c0_29, %c0_30] : memref<3x1x128xi32, #tpu.memory_space<vmem>>, vector<1x1x128xi32>
      %62 = vector.shape_cast %61 : vector<1x1x128xi32> to vector<1x128xi32>
      %63 = vector.shape_cast %60 : vector<1x128xi32> to vector<1x1x128xi32>
      tpu.vector_store %arg5[%c2_28, %c0_29, %c0_30], %63 {strides = array<i32>} : memref<3x1x128xi32, #tpu.memory_space<vmem>>, vector<1x1x128xi32>,
    } else {
    }
    %c16_i32_6 = arith.constant 16 : i32
    %14 = arith.cmpi eq, %arg0, %c16_i32_6 : i32
    %15 = arith.extui %14 : i1 to i32
    %c0_i32_7 = arith.constant 0 : i32
    %16 = arith.cmpi ne, %15, %c0_i32_7 : i32
    scf.if %16 {
      %c0_8 = arith.constant 0 : index
      %17 = memref.load %arg8[%c0_8] : memref<2xi32, #tpu.memory_space<smem>>
      %c0_9 = arith.constant 0 : index
      %c0_10 = arith.constant 0 : index
      %18 = vector.load %arg3[%c0_9, %c0_10] : memref<4x128xf32, #tpu.memory_space<vmem>>, vector<4x128xf32>
      %19 = tpu.bitcast %18 : vector<4x128xf32> -> vector<4x128xi32>
      %20 = vector.broadcast %17 : i32 to vector<4x128xi32>
      %21 = arith.cmpi sgt, %19, %20 : vector<4x128xi32>
      %c0_11 = arith.constant 0 : index
      %c0_12 = arith.constant 0 : index
      %c0_13 = arith.constant 0 : index
      %22 = vector.load %arg5[%c0_11, %c0_12, %c0_13] : memref<3x1x128xi32, #tpu.memory_space<vmem>>, vector<1x1x128xi32>
      %23 = vector.shape_cast %22 : vector<1x1x128xi32> to vector<1x128xi32>
      %24 = arith.extui %21 : vector<4x128xi1> to vector<4x128xi32>
      %cst = arith.constant dense<0> : vector<128xi32>
      %25 = vector.multi_reduction <add>, %24, %cst [0] : vector<4x128xi32> to vector<128xi32>
      %26 = vector.shape_cast %25 : vector<128xi32> to vector<1x128xi32>
      %27 = arith.addi %23, %26 : vector<1x128xi32>
      %c0_14 = arith.constant 0 : index
      %c0_15 = arith.constant 0 : index
      %c0_16 = arith.constant 0 : index
      %28 = vector.load %arg5[%c0_14, %c0_15, %c0_16] : memref<3x1x128xi32, #tpu.memory_space<vmem>>, vector<1x1x128xi32>
      %29 = vector.shape_cast %28 : vector<1x1x128xi32> to vector<1x128xi32>
      %30 = vector.shape_cast %27 : vector<1x128xi32> to vector<1x1x128xi32>
      tpu.vector_store %arg5[%c0_14, %c0_15, %c0_16], %30 {strides = array<i32>} : memref<3x1x128xi32, #tpu.memory_space<vmem>>, vector<1x1x128xi32>,
      %c0_17 = arith.constant 0 : index
      %c0_18 = arith.constant 0 : index
      %31 = vector.load %arg6[%c0_17, %c0_18] : memref<1x128xf32, #tpu.memory_space<vmem>>, vector<1x128xf32>
      %cst_19 = arith.constant 0.000000e+00 : f32
      %32 = vector.broadcast %cst_19 : f32 to vector<4x128xf32>
      %33 = arith.select %21, %18, %32 : vector<4x128xi1>, vector<4x128xf32>
      %cst_20 = arith.constant dense<0.000000e+00> : vector<128xf32>
      %34 = vector.multi_reduction <add>, %33, %cst_20 [0] : vector<4x128xf32> to vector<128xf32>
      %35 = vector.shape_cast %34 : vector<128xf32> to vector<1x128xf32>
      %36 = arith.addf %31, %35 : vector<1x128xf32>
      %c0_21 = arith.constant 0 : index
      %c0_22 = arith.constant 0 : index
      %37 = vector.load %arg6[%c0_21, %c0_22] : memref<1x128xf32, #tpu.memory_space<vmem>>, vector<1x128xf32>
      tpu.vector_store %arg6[%c0_21, %c0_22], %36 {strides = array<i32>} : memref<1x128xf32, #tpu.memory_space<vmem>>, vector<1x128xf32>,
      %c0_23 = arith.constant 0 : index
      %c0_24 = arith.constant 0 : index
      %38 = vector.load %arg7[%c0_23, %c0_24] : memref<1x128xf32, #tpu.memory_space<vmem>>, vector<1x128xf32>
      %cst_25 = arith.constant 0xFF800000 : f32
      %39 = vector.broadcast %cst_25 : f32 to vector<4x128xf32>
      %40 = arith.select %21, %39, %18 : vector<4x128xi1>, vector<4x128xf32>
      %cst_26 = arith.constant dense<0xFF800000> : vector<128xf32>
      %41 = vector.multi_reduction <maximumf>, %40, %cst_26 [0] : vector<4x128xf32> to vector<128xf32>
      %42 = vector.shape_cast %41 : vector<128xf32> to vector<1x128xf32>
      %43 = arith.maximumf %38, %42 : vector<1x128xf32>
      %c0_27 = arith.constant 0 : index
      %c0_28 = arith.constant 0 : index
      %44 = vector.load %arg7[%c0_27, %c0_28] : memref<1x128xf32, #tpu.memory_space<vmem>>, vector<1x128xf32>
      tpu.vector_store %arg7[%c0_27, %c0_28], %43 {strides = array<i32>} : memref<1x128xf32, #tpu.memory_space<vmem>>, vector<1x128xf32>,
      %c0_i32_29 = arith.constant 0 : i32
      %45 = arith.cmpi eq, %arg1, %c0_i32_29 : i32
      %46 = arith.extui %45 : i1 to i32
      %c0_i32_30 = arith.constant 0 : i32
      %47 = arith.cmpi ne, %46, %c0_i32_30 : i32
      scf.if %47 {
        %c0_31 = arith.constant 0 : index
        %c0_32 = arith.constant 0 : index
        %c0_33 = arith.constant 0 : index
        %48 = vector.load %arg5[%c0_31, %c0_32, %c0_33] : memref<3x1x128xi32, #tpu.memory_space<vmem>>, vector<1x1x128xi32>
        %49 = vector.shape_cast %48 : vector<1x1x128xi32> to vector<1x128xi32>
        %50 = vector.shape_cast %49 : vector<1x128xi32> to vector<1x1x128xi32>
        %cst_34 = arith.constant dense<0> : vector<1xi32>
        %51 = vector.multi_reduction <add>, %50, %cst_34 [1, 2] : vector<1x1x128xi32> to vector<1xi32>
        %52 = vector.shape_cast %51 : vector<1xi32> to vector<1x1x1xi32>
        %53 = vector.extract %52[0, 0, 0] : i32 from vector<1x1x1xi32>
        %c0_35 = arith.constant 0 : index
        %c0_36 = arith.constant 0 : index
        %54 = vector.load %arg6[%c0_35, %c0_36] : memref<1x128xf32, #tpu.memory_space<vmem>>, vector<1x128xf32>
        %55 = vector.shape_cast %54 : vector<1x128xf32> to vector<1x1x128xf32>
        %cst_37 = arith.constant dense<0.000000e+00> : vector<1xf32>
        %56 = vector.multi_reduction <add>, %55, %cst_37 [1, 2] : vector<1x1x128xf32> to vector<1xf32>
        %57 = vector.shape_cast %56 : vector<1xf32> to vector<1x1x1xf32>
        %58 = vector.extract %57[0, 0, 0] : f32 from vector<1x1x1xf32>
        %c0_38 = arith.constant 0 : index
        %c0_39 = arith.constant 0 : index
        %59 = vector.load %arg7[%c0_38, %c0_39] : memref<1x128xf32, #tpu.memory_space<vmem>>, vector<1x128xf32>
        %60 = vector.shape_cast %59 : vector<1x128xf32> to vector<1x1x128xf32>
        %cst_40 = arith.constant dense<0xFF800000> : vector<1xf32>
        %61 = vector.multi_reduction <maximumf>, %60, %cst_40 [1, 2] : vector<1x1x128xf32> to vector<1xf32>
        %62 = vector.shape_cast %61 : vector<1xf32> to vector<1x1x1xf32>
        %63 = vector.extract %62[0, 0, 0] : f32 from vector<1x1x1xf32>
        %64 = arith.subi %0, %53 : i32
        %c0_i32_41 = arith.constant 0 : i32
        %65 = arith.maxsi %64, %c0_i32_41 : i32
        %66 = arith.sitofp %65 : i32 to f32
        %67 = arith.mulf %66, %63 : f32
        %68 = arith.addf %58, %67 : f32
        %69 = vector.broadcast %68 : f32 to vector<1x128xf32>
        %c0_42 = arith.constant 0 : index
        %c0_43 = arith.constant 0 : index
        %70 = vector.load %arg4[%c0_42, %c0_43] : memref<1x128xf32, #tpu.memory_space<vmem>>, vector<1x128xf32>
        tpu.vector_store %arg4[%c0_42, %c0_43], %69 {strides = array<i32>} : memref<1x128xf32, #tpu.memory_space<vmem>>, vector<1x128xf32>,
      } else {
      }
    } else {
    }
    return
  }
  func.func @transform_0(%arg0: i32, %arg1: i32, %arg2: memref<1xi32, #tpu.memory_space<smem>>) -> (i32, i32) {
    %c0_i32 = arith.constant 0 : i32
    %c0_i32_0 = arith.constant 0 : i32
    return %arg1, %c0_i32 : i32, i32
  }
  func.func @transform_1(%arg0: i32, %arg1: i32, %arg2: memref<1xi32, #tpu.memory_space<smem>>) -> (i32, i32) {
    %c0_i32 = arith.constant 0 : i32
    %c0_i32_0 = arith.constant 0 : i32
    %c0_i32_1 = arith.constant 0 : i32
    return %c0_i32, %c0_i32_0 : i32, i32
  }
}

</mosaic_0001>

<bundles_post_ra>
// kernel: balance_cross_entropy_loss.2
= control target key start
LH: loop header
LB: loop body
LE: loop exit
PB: predicated region body
PF: predicated region fallthrough
CT: control target
= control target key end

     0   :  { %v243_v0 = vmov 0.0   ;;  %vm150_vm0 = vcmask 1043456   ;;  %s311_s4 = inlined_call_operand.vmem [shape: f32[1,3,1,128], index: 4, kind: output, shape index: {1}]   ;;  %s312_s0 = inlined_call_operand.vmem [shape: f32[4,128], index: 0, kind: input, shape index: {}]   ;;  %s313_s1 = inlined_call_operand.vmem [shape: bf16[4,128], index: 1, kind: input, shape index: {}]   ;;  %s314_s2 = inlined_call_operand.vmem [shape: bf16[4,128], index: 2, kind: input, shape index: {}]   ;;  %s315_s3 = inlined_call_operand.vmem [shape: f32[4,128], index: 3, kind: output, shape index: {0}]  }
   0x1   :  { %119 = vst [vmem:[%s311_s4] sm:$0x1] %v243_v0  ;;  %120 = vst [vmem:[%s311_s4 + $0x1] sm:$0x1] %v243_v0  ;;  %v122_v1 = vld [vmem:[%s312_s0] sm:$0xf] }
   0x2   :  { %121 = vst [vmem:[%s311_s4 + $0x2] sm:$0x1] %v243_v0  ;;  %v123_v2 = vld [vmem:[%s313_s1] sm:$0x3]  ;;  %239 = vlog2.f32 %v122_v1  ;;  %v135_v6 = vsub.f32 1.0, %v122_v1 }
   0x3   :  { %v125_v3 = vld [vmem:[%s314_s2] sm:$0x3]  ;;  %v124_v4 = vunpack.c.l.bf16 %v123_v2 }
   0x4   :  { %v126_v5 = vunpack.c.l.bf16 %v125_v3  ;;  %241 = vlog2.f32 %v135_v6 }
   0x5   :  { %v129_v8 = vsub.f32 1.0, %v124_v4 }
   0x6   :  { %v127_v7 = vmul.f32 %v126_v5, %v124_v4 }
   0x7   :  { %v130_v10 = vmul.f32 %v129_v8, %v126_v5 }
   0x8   :  { %v128_v9 = vfloor.f32 %v127_v7  ;;  %v149_v30 = vld [vmem:[%s311_s4] sm:$0x1]  ;;  %v234_v34 = vld [vmem:[%s311_s4 + $0x1] sm:$0x1] }
   0x9   :  { %v131_v11 = vfloor.f32 %v130_v10  ;;  %v236_v48 = vld [vmem:[%s311_s4 + $0x2] sm:$0x1] }
   0xa   :  { %v151_v12 = vsel %vm150_vm0, %v128_v9, 0.0 }
   0xb   :  { %v152_v13 = vrot.slane %v151_v12, 4  ;;  %v162_v14 = vsel %vm150_vm0, %v131_v11, 0.0 }
   0xc   :  { %v163_v15 = vrot.slane %v162_v14, 4  ;;  %v240_v17 = vpop.eup %239 }
   0xd   :  { %v153_v16 = vadd.f32 %v152_v13, %v151_v12  ;;  %v133_v18 = vmul.f32 0.6931472, %v240_v17 }
   0xe   :  { %v164_v19 = vadd.f32 %v163_v15, %v162_v14  ;;  %v242_v21 = vpop.eup %241 }
   0xf   :  { %v154_v20 = vrot.slane %v153_v16, 2  ;;  %v134_v22 = vmax.f32 %v133_v18, -100.0  ;;  %v137_v23 = vmul.f32 0.6931472, %v242_v21 }
  0x10   :  { %v165_v24 = vrot.slane %v164_v19, 2 }
  0x11   :  { %v155_v25 = vadd.f32 %v154_v20, %v153_v16  ;;  %v138_v26 = vmax.f32 %v137_v23, -100.0  ;;  %v139_v27 = vmul.f32 %v134_v22, %v124_v4 }
  0x12   :  { %v166_v29 = vadd.f32 %v165_v24, %v164_v19 }
  0x13   :  { %v156_v28 = vrot.slane %v155_v25, 1  ;;  %v140_v31 = vmul.f32 %v138_v26, %v129_v8 }
  0x14   :  { %v167_v33 = vrot.slane %v166_v29, 1 }
  0x15   :  { %v157_v32 = vadd.f32 %v156_v28, %v155_v25  ;;  %v141_v35 = vadd.f32 %v140_v31, %v139_v27 }
  0x16   :  { %v168_v37 = vadd.f32 %v167_v33, %v166_v29 }
  0x17   :  { %v158_v36 = vadd.f32 %v157_v32, %v149_v30  ;;  %v142_v38 = vsub.f32 0.0, %v141_v35 }
  0x18   :  { %v169_v39 = vadd.f32 %v234_v34, %v168_v37 }
  0x19   :  { %159 = vst [vmem:[%s311_s4] sm:$0x1] %v158_v36  ;;  %v143_v40 = vmul.f32 %v142_v38, %v131_v11  ;;  %v173_v41 = vmul.f32 %v142_v38, %v128_v9 }
  0x1a   :  { %235 = vst [vmem:[%s311_s4 + $0x1] sm:$0x1] %v169_v39 }
  0x1b   :  { %144 = vst [vmem:[%s315_s3] sm:$0xf] %v143_v40  ;;  %v174_v42 = vsel %vm150_vm0, %v173_v41, 0.0 }
  0x1c   :  { %v175_v43 = vrot.slane %v174_v42, 4 }
  0x1e   :  { %v176_v44 = vadd.f32 %v175_v43, %v174_v42 }
  0x20   :  { %v177_v45 = vrot.slane %v176_v44, 2 }
  0x22   :  { %v178_v46 = vadd.f32 %v177_v45, %v176_v44 }
  0x24   :  { %v179_v47 = vrot.slane %v178_v46, 1 }
  0x26   :  { %v180_v49 = vadd.f32 %v179_v47, %v178_v46 }
  0x28   :  { %v181_v50 = vadd.f32 %v236_v48, %v180_v49 }
  0x2a   :  { %237 = vst [vmem:[%s311_s4 + $0x2] sm:$0x1] %v181_v50 }

// kernel: balance_cross_entropy_loss.3
= control target key start
LH: loop header
LB: loop body
LE: loop exit
PB: predicated region body
PF: predicated region fallthrough
CT: control target
= control target key end

     0   :  { %s530_s11 = smov 0   ;;  %s532_s12 = smov 0   ;;  %s588_s0 = inlined_call_operand.<no memory space> [shape: s32[1], index: 0, kind: input, shape index: {}]   ;;  %s589_s1 = inlined_call_operand.vmem [shape: f32[4,128], index: 1, kind: input, shape index: {}]   ;;  %s590_s2 = inlined_call_operand.vmem [shape: f32[1,128], index: 2, kind: output, shape index: {}]  }
   0x1   :  { %7 = sst [smem:[#allocation7]] %s588_s0  ;;  %s534_s13 = smov 0  }
   0x2 LB: > { %s25_s0 = sadd.s32 1, %s498_s12  ;;  %p425_p0 = scmp.ge.s32.totalorder %s502_s13, 1  ;;  %s502_s13 = sphi %s534_s13, %s13_s13   ;;  %s498_s12 = sphi %s532_s12, %s592_s12   ;;  %s494_s11 = sphi %s530_s11, %s591_s11  }
   0x3   : > { %p27_p1 = scmp.ge.s32.totalorder %s25_s0, 17  ;;  %p95_p2 = scmp.lt.s32.totalorder %s502_s13, 18 }
   0x5   : > { %s594_s0 = smov (%p27_p1, %s25_s0), 0  ;;  %p96_p3 = pnand %p425_p0, %p95_p2 }
   0x6   : > { %s550_s14 = sld [smem:[#allocation7]] (!%p96_p3)  ;;  %p114_p4 = scmp.eq.s32.totalorder (!%p96_p3), %s494_s11, 0 }
   0x7   : > { %99 = sbr.rel (%p96_p3) target bundleno = 544 (0x220), region = 24 }
   0xe   : > { %119 = sbr.rel (!%p114_p4) target bundleno = 21 (0x15), region = 28  ;;  %s504_s15 = smov (%p114_p4), 0   ;;  %v505_v0 = vmov (%p114_p4), 0   ;;  %v506_v1 = vmov (%p114_p4), 0.0   ;;  %v507_v2 = vmov (%p114_p4), -inf  }
   0xf   : > { %121 = sst [smem:[#allocation5]] (%p114_p4), %s504_s15  ;;  %124 = vst [vmem:[#allocation2] sm:$0x1] (%p114_p4), %v505_v0  ;;  %125 = vst [vmem:[#allocation2 + $0x1] sm:$0x1] (%p114_p4), %v505_v0  ;;  %s508_s16 = smov (%p114_p4), 1073741824  }
  0x10   : > { %126 = vst [vmem:[#allocation2 + $0x2] sm:$0x1] (%p114_p4), %v505_v0  ;;  %127 = vst [vmem:[#allocation3] sm:$0x1] (%p114_p4), %v506_v1  ;;  %123 = sst [smem:[#allocation5 + $0x1]] (%p114_p4), %s508_s16 }
  0x11   : > { %128 = vst [vmem:[#allocation4] sm:$0x1] (%p114_p4), %v507_v2 }
  0x15 PF: > { %p129_p5 = scmp.gt.s32.totalorder %s494_s11, 0 }
  0x16   : > { %vm146_vm0 = vcmask (%p129_p5), 1040384   ;;  %v168_v3 = vld [vmem:[#allocation2 + $0x1] sm:$0x1] (%p129_p5)  ;;  %v145_v4 = vld [vmem:[#allocation2] sm:$0x1] (%p129_p5)  ;;  %v509_v6 = vmov (%p129_p5), 0  }
  0x17   : > { %133 = sbr.rel (!%p129_p5) target bundleno = 250 (0xfa), region = 32  ;;  %v169_v5 = vsel (%p129_p5), %vm146_vm0, %v168_v3, 0  ;;  %223 = vst [vmem:[#allocation2 + $0x1] sm:$0x1] (%p129_p5), %v509_v6  ;;  %v147_v7 = vsel (%p129_p5), %vm146_vm0, %v145_v4, 0  ;;  %s554_s17 = sld [smem:[#allocation5 + $0x1]] (%p129_p5) }
  0x18   : > { %222 = vst [vmem:[#allocation2] sm:$0x1] (%p129_p5), %v509_v6  ;;  %v190_v8 = vld [vmem:[#allocation2 + $0x2] sm:$0x1] (%p129_p5)  ;;  %v171_v9 = vshrl.u32 (%p129_p5), %v169_v5, 16  ;;  %v149_v10 = vshrl.u32 (%p129_p5), %v147_v7, 16 }
  0x19   : > { %v170_v11 = vand.u32 (%p129_p5), 65535, %v169_v5  ;;  %v148_v12 = vand.u32 (%p129_p5), 65535, %v147_v7  ;;  %224 = vst [vmem:[#allocation2 + $0x2] sm:$0x1] (%p129_p5), %v509_v6  ;;  %v191_v13 = vsel (%p129_p5), %vm146_vm0, %v190_v8, 0  ;;  %s134_s19 = sld [smem:[#allocation5]] (%p129_p5) }
  0x1a   : > { %v173_v14 = vcvt.s32.f32 (%p129_p5), %v171_v9  ;;  %v151_v15 = vcvt.s32.f32 (%p129_p5), %v149_v10  ;;  %v193_v18 = vshrl.u32 (%p129_p5), %v191_v13, 16  ;;  %v192_v19 = vand.u32 (%p129_p5), 65535, %v191_v13 }
  0x1b   : > { %v172_v16 = vcvt.s32.f32 (%p129_p5), %v170_v11  ;;  %v150_v17 = vcvt.s32.f32 (%p129_p5), %v148_v12 }
  0x1c   : > { %176 = vadd.xlane.f32.xlu1 (%p129_p5), %v173_v14  ;;  %154 = vadd.xlane.f32.xlu0 (%p129_p5), %v151_v15  ;;  %v195_v20 = vcvt.s32.f32 (%p129_p5), %v193_v18  ;;  %v194_v21 = vcvt.s32.f32 (%p129_p5), %v192_v19 }
  0x1d   : > { %s219_s18 = sshra.s32 (%p129_p5), %s554_s17, 2  ;;  %s137_s20 = sadd.s32 (%p129_p5), %s554_s17, %s554_s17 }
  0x1e   : > { %221 = sst [smem:[#allocation5 + $0x1]] %s219_s18  ;;  %s139_s22 = sadd.s32 %s554_s17, %s137_s20 }
  0x1f   : > { %s138_s21 = sor.u32 %s137_s20, %s134_s19  ;;  %s140_s23 = sor.u32 %s139_s22, %s134_s19 }
  0x20   : > { %174 = vadd.xlane.f32.xlu1 %v172_v16  ;;  %152 = vadd.xlane.f32.xlu0 %v150_v17  ;;  %p141_p6 = scmp.lt.s32.totalorder %s138_s21, %s134_s19  ;;  %s136_s24 = sor.u32 %s554_s17, %s134_s19 }
  0x21   : > { %p143_p7 = scmp.lt.s32.totalorder %s140_s23, %s134_s19 }
  0x22   : > { %s596_s21 = smov (%p141_p6, %s138_s21), 2147483647 }
  0x23   : > { %s600_s23 = smov (%p143_p7, %s140_s23), 2147483647 }
  0x24   : > { %198 = vadd.xlane.f32.xlu0 %v195_v20  ;;  %196 = vadd.xlane.f32.xlu1 %v194_v21 }
  0xa9   : > { %v177_v22 = vpop.xlane.xlu1 %176  ;;  %v155_v23 = vpop.xlane.xlu0 %154 }
  0xaa   : > { %v179_v24 = vcvt.f32.s32 %v177_v22  ;;  %v157_v25 = vcvt.f32.s32 %v155_v23 }
  0xac   : > { %v180_v26 = vshll.u32 %v179_v24, 16  ;;  %v158_v29 = vshll.u32 %v157_v25, 16 }
  0xad   : > { %v175_v27 = vpop.xlane.xlu1 %174  ;;  %v153_v28 = vpop.xlane.xlu0 %152 }
  0xae   : > { %v178_v30 = vcvt.f32.s32 %v175_v27  ;;  %v156_v31 = vcvt.f32.s32 %v153_v28 }
  0xb0   : > { %v181_v32 = vadd.s32 %v180_v26, %v178_v30  ;;  %v159_v33 = vadd.s32 %v158_v29, %v156_v31 }
  0xb1   : > { %v199_v34 = vpop.xlane.xlu0 %198  ;;  %v197_v35 = vpop.xlane.xlu1 %196 }
  0xb2   : > { %v182_v36 = vrot.slane %v181_v32, 4  ;;  %v160_v37 = vrot.slane %v159_v33, 4  ;;  %v201_v38 = vcvt.f32.s32 %v199_v34  ;;  %v200_v39 = vcvt.f32.s32 %v197_v35 }
  0xb4   : > { %v183_v40 = vadd.s32 %v182_v36, %v181_v32  ;;  %v202_v41 = vshll.u32 %v201_v38, 16  ;;  %v161_v42 = vadd.s32 %v160_v37, %v159_v33 }
  0xb6   : > { %v203_v43 = vadd.s32 %v202_v41, %v200_v39  ;;  %v162_v44 = vrot.slane %v161_v42, 2  ;;  %v184_v45 = vrot.slane %v183_v40, 2 }
  0xb8   : > { %v204_v46 = vrot.slane %v203_v43, 4  ;;  %v163_v47 = vadd.s32 %v162_v44, %v161_v42  ;;  %v185_v48 = vadd.s32 %v184_v45, %v183_v40 }
  0xba   : > { %v205_v49 = vadd.s32 %v204_v46, %v203_v43  ;;  %v164_v50 = vrot.slane %v163_v47, 1  ;;  %v186_v51 = vrot.slane %v185_v48, 1 }
  0xbc   : > { %v165_v52 = vadd.s32 %v164_v50, %v163_v47  ;;  %v187_v53 = vadd.s32 %v186_v51, %v185_v48  ;;  %v206_v54 = vrot.slane %v205_v49, 2 }
  0xbe   : > { %436 = vpush %v165_v52  ;;  %v207_v55 = vadd.s32 %v206_v54, %v205_v49 }
  0xbf   : > { %438 = vpush %v187_v53 }
  0xc0   : > { %v208_v56 = vrot.slane %v207_v55, 1 }
  0xc2   : > { %v209_v57 = vadd.s32 %v208_v56, %v207_v55 }
  0xc4   : > { %440 = vpush %v209_v57 }
  0xef   : > { %s437_s25 = spop %436 }
  0xf0   : > { %p211_p8 = scmp.ge.s32.totalorder %s437_s25, %s550_s14  ;;  %s439_s26 = spop %438 }
  0xf1   : > { %p213_p9 = scmp.ge.s32.totalorder %s439_s26, %s550_s14 }
  0xf2   : > { %s598_s24 = smov (!%p211_p8, %s136_s24), %s134_s19 }
  0xf3   : > { %s602_s21 = smov (!%p213_p9, %s596_s21), %s598_s24 }
  0xf5   : > { %s441_s27 = spop %440 }
  0xf6   : > { %p215_p10 = scmp.ge.s32.totalorder %s441_s27, %s550_s14 }
  0xf8   : > { %s604_s23 = smov (!%p215_p10, %s600_s23), %s602_s21 }
  0xf9   : > { %218 = sst [smem:[#allocation5]] %s604_s23 }
  0xfa PF: > { %p429_p11 = scmp.ge.s32.totalorder %s494_s11, 16 }
  0xfb   : > { %s229_s28 = sld [smem:[#allocation5]] (!%p429_p11)  ;;  %s430_s29 = sld [smem:[#allocation5 + $0x1]] (!%p429_p11)  ;;  %v240_v58 = vld [vmem:[%s589_s1] sm:$0xf] (!%p429_p11)  ;;  %vm246_vm1 = vcmask (!%p429_p11), 1043456   ;;  %v510_v60 = vmov (!%p429_p11), 0  }
  0xfc   : > { %228 = sbr.rel (%p429_p11) target bundleno = 282 (0x11a), region = 36  ;;  %v242_v14 = vld [vmem:[#allocation2] sm:$0x1] (!%p429_p11)  ;;  %v257_v22 = vld [vmem:[#allocation2 + $0x1] sm:$0x1] (!%p429_p11) }
  0xfd   : > { %v271_v25 = vld [vmem:[#allocation2 + $0x2] sm:$0x1] (!%p429_p11) }
 0x101   : > { %s231_s4 = sor.u32 (!%p429_p11), %s430_s29, %s229_s28  ;;  %s232_s5 = sadd.s32 (!%p429_p11), %s430_s29, %s430_s29 }
 0x102   : > { %v243_v59 = vstv (!%p429_p11), %s231_s4  ;;  %s233_s6 = sor.u32 (!%p429_p11), %s232_s5, %s229_s28  ;;  %s234_s7 = sadd.s32 (!%p429_p11), %s430_s29, %s232_s5 }
 0x103   : > { %vm244_vm2 = vcmp.ge.s32.totalorder %v240_v58, %v243_v59  ;;  %p236_p12 = scmp.lt.s32.totalorder %s233_s6, %s229_s28  ;;  %s235_s8 = sor.u32 %s234_s7, %s229_s28 }
 0x104   : > { %v245_v61 = vsel %vm244_vm2, 1, %v510_v60  ;;  %p238_p13 = scmp.lt.s32.totalorder %s235_s8, %s229_s28 }
 0x105   : > { %v247_v62 = vsel %vm246_vm1, %v245_v61, 0  ;;  %s606_s6 = smov (%p236_p12, %s233_s6), 2147483647 }
 0x106   : > { %v248_v63 = vrot.slane %v247_v62, 4  ;;  %s608_s8 = smov (%p238_p13, %s235_s8), 2147483647  ;;  %v258_v0 = vstv %s606_s6 }
 0x107   : > { %vm259_vm3 = vcmp.ge.s32.totalorder %v240_v58, %v258_v0  ;;  %v272_v2 = vstv %s608_s8 }
 0x108   : > { %v249_v1 = vadd.s32 %v248_v63, %v247_v62  ;;  %v260_v3 = vsel %vm259_vm3, 1, %v510_v60  ;;  %vm273_vm4 = vcmp.ge.s32.totalorder %v240_v58, %v272_v2 }
 0x109   : > { %v261_v5 = vsel %vm246_vm1, %v260_v3, 0  ;;  %v274_v6 = vsel %vm273_vm4, 1, %v510_v60 }
 0x10a   : > { %v250_v4 = vrot.slane %v249_v1, 2  ;;  %v262_v7 = vrot.slane %v261_v5, 4  ;;  %v275_v8 = vsel %vm246_vm1, %v274_v6, 0 }
 0x10b   : > { %v276_v10 = vrot.slane %v275_v8, 4 }
 0x10c   : > { %v251_v9 = vadd.s32 %v250_v4, %v249_v1  ;;  %v263_v11 = vadd.s32 %v262_v7, %v261_v5 }
 0x10d   : > { %v277_v13 = vadd.s32 %v276_v10, %v275_v8 }
 0x10e   : > { %v252_v12 = vrot.slane %v251_v9, 1  ;;  %v264_v15 = vrot.slane %v263_v11, 2 }
 0x10f   : > { %v278_v17 = vrot.slane %v277_v13, 2 }
 0x110   : > { %v253_v16 = vadd.s32 %v252_v12, %v251_v9  ;;  %v265_v18 = vadd.s32 %v264_v15, %v263_v11 }
 0x111   : > { %v279_v20 = vadd.s32 %v278_v17, %v277_v13 }
 0x112   : > { %v254_v19 = vadd.s32 %v253_v16, %v242_v14  ;;  %v266_v21 = vrot.slane %v265_v18, 1 }
 0x113   : > { %v280_v23 = vrot.slane %v279_v20, 1 }
 0x114   : > { %255 = vst [vmem:[#allocation2] sm:$0x1] %v254_v19  ;;  %v267_v24 = vadd.s32 %v266_v21, %v265_v18 }
 0x115   : > { %v281_v26 = vadd.s32 %v280_v23, %v279_v20 }
 0x116   : > { %v268_v27 = vadd.s32 %v267_v24, %v257_v22 }
 0x117   : > { %v282_v28 = vadd.s32 %v281_v26, %v271_v25 }
 0x118   : > { %269 = vst [vmem:[#allocation2 + $0x1] sm:$0x1] %v268_v27 }
 0x119   : > { %283 = vst [vmem:[#allocation2 + $0x2] sm:$0x1] %v282_v28 }
 0x11a PF: > { %p431_p0 = scmp.ne.s32.totalorder %s494_s11, 16 }
 0x11b   : > { %s288_s9 = sld [smem:[#allocation5]] (!%p431_p0)  ;;  %v289_v29 = vld [vmem:[%s589_s1] sm:$0xf] (!%p431_p0)  ;;  %vm295_vm5 = vcmask (!%p431_p0), 1043456   ;;  %v511_v31 = vmov (!%p431_p0), 0   ;;  %vm331_vm7 = vcmask (!%p431_p0), 1040384  }
 0x11c   : > { %287 = sbr.rel (%p431_p0) target bundleno = 544 (0x220), region = 40  ;;  %v293_v53 = vld [vmem:[#allocation2] sm:$0x1] (!%p431_p0)  ;;  %v305_v54 = vld [vmem:[#allocation3] sm:$0x1] (!%p431_p0) }
 0x11d   : > { %v316_v55 = vld [vmem:[#allocation4] sm:$0x1] (!%p431_p0) }
 0x121   : > { %v291_v30 = vstv (!%p431_p0), %s288_s9 }
 0x122   : > { %vm292_vm6 = vcmp.gt.s32.totalorder (!%p431_p0), %v289_v29, %v291_v30 }
 0x123   : > { %v294_v32 = vsel %vm292_vm6, 1, %v511_v31  ;;  %v306_v33 = vsel %vm292_vm6, %v289_v29, 0.0  ;;  %v317_v34 = vsel %vm292_vm6, -inf, %v289_v29 }
 0x124   : > { %v296_v35 = vsel %vm295_vm5, %v294_v32, 0  ;;  %v307_v36 = vsel %vm295_vm5, %v306_v33, 0.0  ;;  %v318_v37 = vsel %vm295_vm5, %v317_v34, -inf }
 0x125   : > { %v297_v38 = vrot.slane %v296_v35, 4  ;;  %v308_v39 = vrot.slane %v307_v36, 4  ;;  %v319_v40 = vrot.slane %v318_v37, 4 }
 0x127   : > { %v298_v41 = vadd.s32 %v297_v38, %v296_v35  ;;  %v309_v42 = vadd.f32 %v308_v39, %v307_v36  ;;  %v320_v43 = vmax.f32 %v318_v37, %v319_v40 }
 0x129   : > { %v299_v44 = vrot.slane %v298_v41, 2  ;;  %v310_v45 = vrot.slane %v309_v42, 2  ;;  %v321_v46 = vrot.slane %v320_v43, 2 }
 0x12b   : > { %v300_v47 = vadd.s32 %v299_v44, %v298_v41  ;;  %v311_v48 = vadd.f32 %v310_v45, %v309_v42  ;;  %v322_v49 = vmax.f32 %v320_v43, %v321_v46 }
 0x12d   : > { %v301_v50 = vrot.slane %v300_v47, 1  ;;  %v312_v51 = vrot.slane %v311_v48, 1  ;;  %v323_v52 = vrot.slane %v322_v49, 1 }
 0x12f   : > { %v302_v56 = vadd.s32 %v301_v50, %v300_v47  ;;  %v313_v57 = vadd.f32 %v312_v51, %v311_v48  ;;  %v324_v58 = vmax.f32 %v322_v49, %v323_v52 }
 0x131   : > { %v303_v59 = vadd.s32 %v302_v56, %v293_v53  ;;  %v314_v60 = vadd.f32 %v313_v57, %v305_v54  ;;  %v325_v61 = vmax.f32 %v316_v55, %v324_v58 }
 0x133   : > { %304 = vst [vmem:[#allocation2] sm:$0x1] %v303_v59  ;;  %315 = vst [vmem:[#allocation3] sm:$0x1] %v314_v60 }
 0x134   : > { %326 = vst [vmem:[#allocation4] sm:$0x1] %v325_v61 }
 0x13a   : > { %v330_v62 = vld [vmem:[#allocation2] sm:$0x1]  ;;  %v352_v63 = vld [vmem:[#allocation3] sm:$0x1] }
 0x13b   : > { %v363_v0 = vld [vmem:[#allocation4] sm:$0x1]  ;;  %v332_v1 = vsel %vm331_vm7, %v330_v62, 0  ;;  %v353_v2 = vsel %vm331_vm7, %v352_v63, 0.0 }
 0x13c   : > { %v334_v3 = vshrl.u32 %v332_v1, 16  ;;  %v333_v4 = vand.u32 65535, %v332_v1  ;;  %354 = vadd.xlane.f32.xlu1 %v353_v2  ;;  %v364_v5 = vsel %vm331_vm7, %v363_v0, -inf }
 0x13e   : > { %v336_v6 = vcvt.s32.f32 %v334_v3  ;;  %v335_v7 = vcvt.s32.f32 %v333_v4 }
 0x140   : > { %339 = vadd.xlane.f32.xlu0 %v336_v6  ;;  %365 = vmax.xlane.f32.xlu1 %v364_v5 }
 0x144   : > { %337 = vadd.xlane.f32.xlu0 %v335_v7 }
 0x1c9   : > { %v355_v8 = vpop.xlane.xlu1 %354 }
 0x1ca   : > { %v356_v10 = vrot.slane %v355_v8, 4 }
 0x1cc   : > { %v357_v16 = vadd.f32 %v356_v10, %v355_v8 }
 0x1cd   : > { %v340_v9 = vpop.xlane.xlu0 %339  ;;  %v366_v11 = vpop.xlane.xlu1 %365 }
 0x1ce   : > { %v342_v12 = vcvt.f32.s32 %v340_v9  ;;  %v367_v13 = vrot.slane %v366_v11, 4  ;;  %v358_v21 = vrot.slane %v357_v16, 2 }
 0x1d0   : > { %v368_v14 = vmax.f32 %v366_v11, %v367_v13  ;;  %v343_v17 = vshll.u32 %v342_v12, 16  ;;  %v359_v25 = vadd.f32 %v358_v21, %v357_v16 }
 0x1d1   : > { %v338_v15 = vpop.xlane.xlu0 %337 }
 0x1d2   : > { %v341_v18 = vcvt.f32.s32 %v338_v15  ;;  %v369_v20 = vrot.slane %v368_v14, 2  ;;  %v360_v29 = vrot.slane %v359_v25, 1 }
 0x1d4   : > { %v344_v19 = vadd.s32 %v343_v17, %v341_v18  ;;  %v370_v24 = vmax.f32 %v368_v14, %v369_v20  ;;  %v361_v33 = vadd.f32 %v360_v29, %v359_v25 }
 0x1d6   : > { %v345_v22 = vrot.slane %v344_v19, 4  ;;  %v371_v28 = vrot.slane %v370_v24, 1 }
 0x1d8   : > { %v346_v23 = vadd.s32 %v345_v22, %v344_v19  ;;  %v372_v32 = vmax.f32 %v370_v24, %v371_v28 }
 0x1da   : > { %v347_v26 = vrot.slane %v346_v23, 2 }
 0x1dc   : > { %v348_v27 = vadd.s32 %v347_v26, %v346_v23 }
 0x1de   : > { %v349_v30 = vrot.slane %v348_v27, 1 }
 0x1e0   : > { %v350_v31 = vadd.s32 %v349_v30, %v348_v27 }
 0x1e2   : > { %442 = vpush %v350_v31 }
 0x1e3   : > { %444 = vpush %v361_v33 }
 0x1e4   : > { %446 = vpush %v372_v32 }
 0x213   : > { %s443_s11 = spop %442 }
 0x214   : > { %s374_s16 = ssub.s32 %s550_s14, %s443_s11  ;;  %s445_s17 = spop %444 }
 0x215   : > { %p375_p1 = scmp.gt.s32.totalorder %s374_s16, 0  ;;  %s447_s19 = spop %446 }
 0x217   : > { %s610_s16 = smov (!%p375_p1, %s374_s16), 0 }
 0x218   : > { %s377_s18 = scvt.s32.f32 %s610_s16 }
 0x21a   : > { %s378_s20 = smul.f32 %s447_s19, %s377_s18 }
 0x21c   : > { %s379_s21 = sadd.f32 %s445_s17, %s378_s20 }
 0x21e   : > { %v380_v34 = vstv %s379_s21 }
 0x21f   : > { %381 = vst [vmem:[%s590_s2] sm:$0x1] %v380_v34 }
 0x220 PF: > { %s13_s13 = sadd.s32 1, %s502_s13   ;;  %s591_s11 = smov %s498_s12 }
 0x221   : > { %p10_p2 = scmp.ge.s32.totalorder %s13_s13, 19   ;;  %s592_s12 = smov %s594_s0 }
 0x223   :  { %12 = sbr.rel (!%p10_p2) target bundleno = 2 (0x2), region = 78 }

</bundles_post_ra>
